<compile_context>
chip_gen: v7x
topology: tpu7x:2x2x1
jax: 0.10.0
libtpu: 0.0.40
codegen_flags: <defaults>
</compile_context>

<pallas_src>
import functools
import math

import jax
import jax.numpy as jnp
from jax import lax
from jax.experimental import pallas as pl
from jax.experimental.pallas import tpu as pltpu

# dot_general dimension_numbers: contract the last dim of both operands
# (y = x @ W.T for PyTorch (out, in) weights, q @ k.T for scores — no transposes).
_CONTRACT_LAST = (((1,), (1,)), ((), ()))


# ---------------------------------------------------------------------------
# Hardware-aware sizing helpers.
# ---------------------------------------------------------------------------
def _vmem_capacity_bytes():
    try:
        return int(pltpu.get_tpu_info().vmem_capacity_bytes)
    except Exception:
        return 64 << 20  # conservative fallback (v7x per-core VMEM)


def _vmem_limit(working_bytes):
    cap = int(0.85 * _vmem_capacity_bytes())
    return int(min(max(2 * working_bytes, 16 << 20), cap))


def _preferred_seq_tile():
    # 256-row tiles fill the v6e/v7x 256x256 MXU; v5e's MXU is 128x128.
    try:
        kind = jax.devices()[0].device_kind.lower()
        if "v5 lite" in kind or "v5e" in kind:
            return 128
    except Exception:
        pass
    return 256


def _pick_tile(n, pref):
    """Largest multiple-of-8 divisor of n that is <= pref (or n itself)."""
    if n <= pref:
        return n
    for t in range(pref - pref % 8, 7, -8):
        if n % t == 0:
            return t
    # TODO(synk): pad ragged dims instead of falling back to a full-extent block.
    return n


# ---------------------------------------------------------------------------
# Linear kernel:  y = x @ W.T + b   (W in PyTorch (out, in) layout).
# ---------------------------------------------------------------------------
def _linear_kernel(x_ref, w_ref, b_ref, o_ref):
    # x: (tm, D_in);  w: (D_out, D_in) bf16;  b: (1, D_out) f32.
    x = x_ref[...].astype(jnp.bfloat16)
    y = lax.dot_general(x, w_ref[...], _CONTRACT_LAST,
                        preferred_element_type=jnp.float32)
    o_ref[...] = (y + b_ref[...]).astype(o_ref.dtype)


def _linear(x, w_bf16, b_f32_2d, out_dtype, row_tile=512):
    M, d_in = x.shape
    d_out = b_f32_2d.shape[1]
    tm = _pick_tile(M, row_tile)

    x_bytes = jnp.dtype(x.dtype).itemsize
    out_bytes = jnp.dtype(out_dtype).itemsize
    working = (2 * tm * d_in * x_bytes        # x blocks (double-buffered)
               + 2 * d_out * d_in * 2         # bf16 weight blocks
               + 2 * d_out * 4                # bias blocks
               + 2 * tm * d_out * out_bytes   # output blocks
               + tm * d_out * 4               # f32 matmul accumulator
               + tm * d_in * 2)               # bf16 cast of x
    # TODO(synk): the weight/bias index maps are constant; pipeline_mode=pl.Buffered(1)
    # would single-buffer them and free another d_out*d_in*2 bytes of VMEM.

    return pl.pallas_call(
        _linear_kernel,
        out_shape=jax.ShapeDtypeStruct((M, d_out), out_dtype),
        grid_spec=pltpu.PrefetchScalarGridSpec(
            num_scalar_prefetch=0,
            grid=(M // tm,),
            in_specs=[
                pl.BlockSpec((tm, d_in), lambda i: (i, 0)),
                pl.BlockSpec((d_out, d_in), lambda i: (0, 0)),
                pl.BlockSpec((1, d_out), lambda i: (0, 0)),
            ],
            out_specs=pl.BlockSpec((tm, d_out), lambda i: (i, 0)),
        ),
        compiler_params=pltpu.CompilerParams(
            dimension_semantics=("parallel",),
            vmem_limit_bytes=_vmem_limit(working),
        ),
    )(x, w_bf16, b_f32_2d)


# ---------------------------------------------------------------------------
# Flash attention kernel (head-major layout, online softmax, K/V seq-tiled).
# ---------------------------------------------------------------------------
def _flash_attn_kernel(q_ref, k_ref, v_ref, o_ref, m_sc, l_sc, acc_sc, *, scale):
    kv = pl.program_id(3)

    @pl.when(kv == 0)
    def _():
        m_sc[...] = jnp.full_like(m_sc, -jnp.inf)
        l_sc[...] = jnp.zeros_like(l_sc)
        acc_sc[...] = jnp.zeros_like(acc_sc)

    q = q_ref[0, 0]                       # (tq, d_k) bf16
    k = k_ref[0, 0]                       # (tk, d_k) bf16
    v = v_ref[0, 0]                       # (tk, d_k) bf16

    # scores = (q @ k.T) / sqrt(d_k); bf16 MXU operands, f32 accumulation.
    s = lax.dot_general(q, k, _CONTRACT_LAST,
                        preferred_element_type=jnp.float32) * scale   # (tq, tk) f32
    # TODO(synk): optional attention mask (mask == 0 -> -1e9) not implemented.

    m_prev = m_sc[...]
    m_new = jnp.maximum(m_prev, jnp.max(s, axis=-1, keepdims=True))
    alpha = jnp.exp(m_prev - m_new)                                   # f32 (v5e-safe)
    p = jnp.exp(s - m_new)
    l_sc[...] = alpha * l_sc[...] + jnp.sum(p, axis=-1, keepdims=True)
    acc_sc[...] = alpha * acc_sc[...] + jnp.dot(
        p.astype(jnp.bfloat16), v, preferred_element_type=jnp.float32)
    m_sc[...] = m_new

    @pl.when(kv == pl.num_programs(3) - 1)
    def _():
        o_ref[0, 0] = (acc_sc[...]
                       * pl.reciprocal(l_sc[...], approx=True)).astype(o_ref.dtype)


def _flash_attention(qh, kh, vh, *, scale, q_tile, kv_tile):
    B, H, S, d_k = qh.shape
    tq = _pick_tile(S, q_tile)
    tk = _pick_tile(S, kv_tile)

    working = (2 * tq * d_k * 2      # Q blocks (bf16, double-buffered)
               + 4 * tk * d_k * 2    # K, V blocks
               + 2 * tq * d_k * 2    # O blocks
               + 4 * tq * 4          # m, l scratches
               + tq * d_k * 4        # f32 acc scratch
               + 4 * tq * tk * 4)    # scores / exp / temporaries

    return pl.pallas_call(
        functools.partial(_flash_attn_kernel, scale=scale),
        out_shape=jax.ShapeDtypeStruct((B, H, S, d_k), jnp.bfloat16),
        grid_spec=pltpu.PrefetchScalarGridSpec(
            num_scalar_prefetch=0,
            grid=(B, H, S // tq, S // tk),
            in_specs=[
                pl.BlockSpec((1, 1, tq, d_k), lambda b, h, qi, ki: (b, h, qi, 0)),
                pl.BlockSpec((1, 1, tk, d_k), lambda b, h, qi, ki: (b, h, ki, 0)),
                pl.BlockSpec((1, 1, tk, d_k), lambda b, h, qi, ki: (b, h, ki, 0)),
            ],
            out_specs=pl.BlockSpec((1, 1, tq, d_k),
                                   lambda b, h, qi, ki: (b, h, qi, 0)),
            scratch_shapes=[
                pltpu.VMEM((tq, 1), jnp.float32),    # running max
                pltpu.VMEM((tq, 1), jnp.float32),    # running sum
                pltpu.VMEM((tq, d_k), jnp.float32),  # unnormalized output acc
            ],
        ),
        compiler_params=pltpu.CompilerParams(
            dimension_semantics=("parallel", "parallel", "parallel", "arbitrary"),
            vmem_limit_bytes=_vmem_limit(working),
        ),
    )(qh, kh, vh)


# ---------------------------------------------------------------------------
# Full module forward.
# ---------------------------------------------------------------------------
def multi_head_self_attention(q, k, v, w_q, b_q, w_o, b_o, *, num_heads,
                              q_tile=None, kv_tile=None):
    """q, k, v: (B, S, D) f32.  w_q/w_o: (D, D) PyTorch (out, in).  b_q/b_o: (D,)."""
    B, S, D = q.shape
    assert D % num_heads == 0, "d_model must be divisible by num_heads"
    d_k = D // num_heads

    pref = _preferred_seq_tile()
    q_tile = pref if q_tile is None else q_tile
    kv_tile = pref if kv_tile is None else kv_tile

    # Weights cast to bf16 once in the wrapper (MXU operands; half DMA/VMEM bytes).
    w_q_bf = w_q.astype(jnp.bfloat16)
    w_o_bf = w_o.astype(jnp.bfloat16)
    b_q2 = b_q.reshape(1, D).astype(jnp.float32)
    b_o2 = b_o.reshape(1, D).astype(jnp.float32)

    # --- 1. Input projections, hoisted: computed exactly once (not per q-tile).
    # NOTE (intentional): the reference forward projects Q, K and V all with W_q.
    x = jnp.stack([q, k, v]).reshape(3 * B * S, D)
    proj = _linear(x, w_q_bf, b_q2, out_dtype=jnp.bfloat16)            # (3BS, D) bf16

    # split_heads -> head-major (B, H, S, d_k): per-head access along leading dims,
    # so the attention kernel never lane-slices at non-128 offsets.
    proj = proj.reshape(3, B, S, num_heads, d_k).transpose(0, 1, 3, 2, 4)
    qh, kh, vh = proj[0], proj[1], proj[2]                             # (B, H, S, d_k)

    # --- 2. Flash attention over sequence-tiled K/V with online softmax.
    attn = _flash_attention(qh, kh, vh, scale=1.0 / math.sqrt(d_k),
                            q_tile=q_tile, kv_tile=kv_tile)            # (B,H,S,dk) bf16

    # --- 3. combine_heads + output projection.
    attn = attn.transpose(0, 2, 1, 3).reshape(B * S, D)                # (BS, D) bf16
    out = _linear(attn, w_o_bf, b_o2, out_dtype=jnp.float32)           # (BS, D) f32
    return out.reshape(B, S, D)


# ---------------------------------------------------------------------------
# Pure-JAX f32 reference (matches the PyTorch module forward exactly).
# ---------------------------------------------------------------------------
def _reference(q, k, v, w_q, b_q, w_o, b_o, *, num_heads):
    B, S, D = q.shape
    d_k = D // num_heads

    def proj(x, w, b):
        return jnp.einsum("bsd,ed->bse", x, w) + b

    def split(x):
        return x.reshape(B, S, num_heads, d_k).transpose(0, 2, 1, 3)   # (B,H,S,dk)

    Q = split(proj(q, w_q, b_q))
    K = split(proj(k, w_q, b_q))
    V = split(proj(v, w_q, b_q))
    s = jnp.einsum("bhqd,bhkd->bhqk", Q, K) / math.sqrt(d_k)
    p = jax.nn.softmax(s, axis=-1)
    a = jnp.einsum("bhqk,bhkd->bhqd", p, V)
    a = a.transpose(0, 2, 1, 3).reshape(B, S, D)
    return jnp.einsum("bsd,ed->bse", a, w_o) + b_o


if __name__ == "__main__":
    B, S, D, H = 2, 8, 32, 4

    key = jax.random.PRNGKey(0)
    kq, kk, kv, kwq, kbq, kwo, kbo = jax.random.split(key, 7)

    q = jax.random.normal(kq, (B, S, D), dtype=jnp.float32)
    k = jax.random.normal(kk, (B, S, D), dtype=jnp.float32)
    v = jax.random.normal(kv, (B, S, D), dtype=jnp.float32)

    # PyTorch Linear-style uniform init with bound 1/sqrt(fan_in).
    bound = 1.0 / math.sqrt(D)
    w_q = jax.random.uniform(kwq, (D, D), jnp.float32, -bound, bound)
    b_q = jax.random.uniform(kbq, (D,), jnp.float32, -bound, bound)
    w_o = jax.random.uniform(kwo, (D, D), jnp.float32, -bound, bound)
    b_o = jax.random.uniform(kbo, (D,), jnp.float32, -bound, bound)
    # W_k / W_v exist in the module but are unused in its forward; omitted here.

    out = multi_head_self_attention(q, k, v, w_q, b_q, w_o, b_o, num_heads=H)
    out = jax.block_until_ready(out)

    ref = _reference(q, k, v, w_q, b_q, w_o, b_o, num_heads=H)
    assert out.shape == (B, S, D)
    # bf16 MXU operands (f32 accumulation) + approx reciprocal -> loose tolerance.
    assert jnp.allclose(out, ref, atol=3e-2, rtol=3e-2), "mismatch vs reference"

    print("KERNEL_OK")
</pallas_src>

<mosaic_0001>
module attributes {stable_mosaic.version = 11 : i64} {
  func.func @_linear_kernel(%arg0: i32, %arg1: memref<48x32xf32, #tpu.memory_space<vmem>>, %arg2: memref<32x32xbf16, #tpu.memory_space<vmem>>, %arg3: memref<1x32xf32, #tpu.memory_space<vmem>>, %arg4: memref<48x32xbf16, #tpu.memory_space<vmem>>) attributes {dimension_semantics = [#tpu.dimension_semantics<parallel>], iteration_bounds = array<i64: 1>, scalar_prefetch = 0 : i64, scratch_operands = 0 : i64, tpu.core_type = #tpu.core_type<tc>, window_params = [{transform_indices = @transform_0, window_bounds = array<i64: 48, 32>}, {pipeline_mode = #tpu.pipeline_mode<synchronous>, transform_indices = @transform_1, window_bounds = array<i64: 32, 32>}, {pipeline_mode = #tpu.pipeline_mode<synchronous>, transform_indices = @transform_2, window_bounds = array<i64: 1, 32>}, {transform_indices = @transform_3, window_bounds = array<i64: 48, 32>}]} {
    %c0 = arith.constant 0 : index
    %c0_0 = arith.constant 0 : index
    %0 = vector.load %arg1[%c0, %c0_0] : memref<48x32xf32, #tpu.memory_space<vmem>>, vector<48x32xf32>
    %1 = arith.truncf %0 : vector<48x32xf32> to vector<48x32xbf16>
    %c0_1 = arith.constant 0 : index
    %c0_2 = arith.constant 0 : index
    %2 = vector.load %arg2[%c0_1, %c0_2] : memref<32x32xbf16, #tpu.memory_space<vmem>>, vector<32x32xbf16>
    %cst = arith.constant dense<0.000000e+00> : vector<48x32xf32>
    %3 = tpu.matmul %1, %2, %cst {dimension_numbers = #tpu.dot_dimension_numbers<[1], [1], [0], [0], [0, 0, 1, 0], [], []>} : vector<48x32xbf16>, vector<32x32xbf16>, vector<48x32xf32> -> vector<48x32xf32>
    %c0_3 = arith.constant 0 : index
    %c0_4 = arith.constant 0 : index
    %4 = vector.load %arg3[%c0_3, %c0_4] : memref<1x32xf32, #tpu.memory_space<vmem>>, vector<1x32xf32>
    %5 = vector.broadcast %4 : vector<1x32xf32> to vector<48x32xf32>
    %6 = arith.addf %3, %5 : vector<48x32xf32>
    %7 = arith.truncf %6 : vector<48x32xf32> to vector<48x32xbf16>
    %c0_5 = arith.constant 0 : index
    %c0_6 = arith.constant 0 : index
    %8 = vector.load %arg4[%c0_5, %c0_6] : memref<48x32xbf16, #tpu.memory_space<vmem>>, vector<48x32xbf16>
    tpu.vector_store %arg4[%c0_5, %c0_6], %7 {strides = array<i32>} : memref<48x32xbf16, #tpu.memory_space<vmem>>, vector<48x32xbf16>,
    return
  }
  func.func @transform_0(%arg0: i32) -> (i32, i32) {
    %c0_i32 = arith.constant 0 : i32
    %c0_i32_0 = arith.constant 0 : i32
    return %arg0, %c0_i32 : i32, i32
  }
  func.func @transform_1(%arg0: i32) -> (i32, i32) {
    %c0_i32 = arith.constant 0 : i32
    %c0_i32_0 = arith.constant 0 : i32
    %c0_i32_1 = arith.constant 0 : i32
    return %c0_i32, %c0_i32_0 : i32, i32
  }
  func.func @transform_2(%arg0: i32) -> (i32, i32) {
    %c0_i32 = arith.constant 0 : i32
    %c0_i32_0 = arith.constant 0 : i32
    %c0_i32_1 = arith.constant 0 : i32
    return %c0_i32, %c0_i32_0 : i32, i32
  }
  func.func @transform_3(%arg0: i32) -> (i32, i32) {
    %c0_i32 = arith.constant 0 : i32
    %c0_i32_0 = arith.constant 0 : i32
    return %arg0, %c0_i32 : i32, i32
  }
}

</mosaic_0001>

<bundles_post_ra>
// kernel: tpu_custom_call.1
= control target key start
LH: loop header
LB: loop body
LE: loop exit
PB: predicated region body
PF: predicated region fallthrough
CT: control target
= control target key end

     0   :  { %vm45_vm0 = vcmask 261120   ;;  %v200_v0 = vmov 0.0   ;;  %vm201_vm1 = vmmov 0   ;;  %vm142_vm2 = vcmask 257024   ;;  %s281_s1 = inlined_call_operand.vmem [shape: bf16[32,32], index: 1, kind: input, shape index: {}]   ;;  %s282_s0 = inlined_call_operand.vmem [shape: f32[48,32], index: 0, kind: input, shape index: {}]   ;;  %s283_s2 = inlined_call_operand.vmem [shape: f32[1,32], index: 2, kind: input, shape index: {}]   ;;  %s284_s3 = inlined_call_operand.vmem [shape: bf16[48,32], index: 3, kind: output, shape index: {}]  }
   0x1   :  { %192 = vmatprep.subr.bf16.mxu1 %v200_v0  ;;  %v198_v1 = vld [vmem:[%s281_s1] sm:$0xff]   ;;  %176 = vmatprep.subr.bf16.mxu0 %v200_v0  ;;  %v199_v3 = vld [vmem:[%s281_s1 + $0x8] sm:$0xff]   ;;  %v17_v5 = vld [vmem:[%s282_s0 + $0x10] sm:$0xff] }
   0x2   :  { %184 = vmatprep.mubr.msk.bf16.mxu1 %vm201_vm1, %v200_v0  ;;  %180 = vmatprep.mubr.msk.bf16.mxu0 %vm201_vm1, %v200_v0  ;;  %v56_v2 = vsel %vm45_vm0, %v198_v1, 0  ;;  %v59_v4 = vsel %vm45_vm0, %v199_v3, 0  ;;  %v18_v6 = vld [vmem:[%s282_s0 + $0x18] sm:$0xff]  ;;  %v15_v7 = vld [vmem:[%s282_s0] sm:$0xff]  ;;  %v16_v8 = vld [vmem:[%s282_s0 + $0x8] sm:$0xff] }
   0x3   :  { %194 = vmatpush3.bf16.xpose.msra.mxu1 %v56_v2  ;;  %177 = vmatpush3.bf16.xpose.msra.mxu0 %v56_v2  ;;  %v22_v9 = vpack.c.bf16 %v18_v6, %v17_v5  ;;  %v21_v10 = vpack.c.bf16 %v16_v8, %v15_v7  ;;  %v19_v11 = vld [vmem:[%s282_s0 + $0x20] sm:$0xff]  ;;  %v20_v12 = vld [vmem:[%s282_s0 + $0x28] sm:$0xff] }
   0x4   :  { %193 = vmatprep.subr.bf16.mxu1 %v200_v0  ;;  %178 = vmatprep.subr.bf16.mxu0 %v200_v0  ;;  %v23_v13 = vpack.c.bf16 %v20_v12, %v19_v11  ;;  %v153_v14 = vld [vmem:[%s283_s2] ss:$0 sm:$0xff] }
   0xb   :  { %195 = vmatpush3.bf16.xpose.msra.mxu1 %v59_v4  ;;  %179 = vmatpush3.bf16.xpose.msra.mxu0 %v59_v4 }
  0x12   :  { %185 = vmatmul.mubr.msk.bf16.vlgmr.msra.gmra.mrb[0].mxu1 %vm45_vm0, %v22_v9  ;;  %181 = vmatmul.mubr.msk.bf16.vlgmr.msra.gmra.mrb[0].mxu0 %vm45_vm0, %v21_v10 }
  0x13   :  { %188 = vmatprep.mubr.msk.bf16.mxu1 %vm201_vm1, %v200_v0 }
  0x1a   :  { %189 = vmatmul.mubr.msk.bf16.gmra.mrb[4].mxu1 %vm45_vm0, %v23_v13 }
  0xe5   :  { %v103_v15 = vpop.f32.mrb[0].mxu1  ;;  %v95_v16 = vpop.f32.mrb[0].mxu0 }
  0xe6   :  { %v104_v17 = vadd.f32 %v153_v14, %v103_v15  ;;  %v186_v18 = vpop.f32.mrb[1].mxu1  ;;  %v96_v19 = vadd.f32 %v153_v14, %v95_v16  ;;  %v182_v20 = vpop.f32.mrb[1].mxu0 }
  0xe7   :  { %v106_v21 = vpop.f32.mrb[2].mxu1  ;;  %v98_v22 = vpop.f32.mrb[2].mxu0 }
  0xe8   :  { %v167_v23 = vpack.c.bf16 %v104_v17, %v104_v17  ;;  %v107_v24 = vadd.f32 %v153_v14, %v106_v21  ;;  %v187_v25 = vpop.f32.mrb[3].mxu1  ;;  %v165_v26 = vpack.c.bf16 %v96_v19, %v96_v19  ;;  %v99_v27 = vadd.f32 %v153_v14, %v98_v22  ;;  %v183_v28 = vpop.f32.mrb[3].mxu0 }
  0xea   :  { %145 = vst.msk [vmem:[%s284_s3 + $0x8] sm:$0xf] %vm142_vm2, %v167_v23  ;;  %v168_v29 = vpack.c.bf16 %v107_v24, %v107_v24  ;;  %143 = vst.msk [vmem:[%s284_s3] sm:$0xf] %vm142_vm2, %v165_v26  ;;  %v166_v30 = vpack.c.bf16 %v99_v27, %v99_v27 }
  0xec   :  { %146 = vst.msk [vmem:[%s284_s3 + $0xc] sm:$0xf] %vm142_vm2, %v168_v29  ;;  %144 = vst.msk [vmem:[%s284_s3 + $0x4] sm:$0xf] %vm142_vm2, %v166_v30 }
  0xed   :  { %v111_v31 = vpop.f32.mrb[4].mxu1 }
  0xee   :  { %v112_v32 = vadd.f32 %v153_v14, %v111_v31  ;;  %v190_v33 = vpop.f32.mrb[5].mxu1 }
  0xef   :  { %v114_v34 = vpop.f32.mrb[6].mxu1 }
  0xf0   :  { %v169_v35 = vpack.c.bf16 %v112_v32, %v112_v32  ;;  %v115_v36 = vadd.f32 %v153_v14, %v114_v34  ;;  %v191_v37 = vpop.f32.mrb[7].mxu1 }
  0xf2   :  { %147 = vst.msk [vmem:[%s284_s3 + $0x10] sm:$0xf] %vm142_vm2, %v169_v35  ;;  %v170_v38 = vpack.c.bf16 %v115_v36, %v115_v36 }
  0xf4   :  { %148 = vst.msk [vmem:[%s284_s3 + $0x14] sm:$0xf] %vm142_vm2, %v170_v38 }

</bundles_post_ra>
